<compile_context>
chip_gen: v6e
topology: v6e:2x2x1
jax: 0.10.0
libtpu: 0.0.40
codegen_flags: <defaults>
</compile_context>

<pallas_src>
import functools

import jax
import jax.numpy as jnp
from jax.experimental import pallas as pl
from jax.experimental.pallas import tpu as pltpu


_MAX_TB = 512                           # max batch rows per tile
_MIN_SPLIT_BATCH = 32                   # above this, force >=2 parallel grid steps
_VMEM_INPUT_BUDGET = 16 * 1024 * 1024   # per-step budget: DMA windows + intermediates
_VMEM_LIMIT_BYTES = 48 * 1024 * 1024    # scoped VMEM limit (safe on v5e/v6e/v7x)


def _round_up(v: int, m: int) -> int:
    return ((v + m - 1) // m) * m


def _norm_block(requested: int, full: int, multiple: int) -> int:
    """Round a user-supplied block size to a legal tile (or the full dim)."""
    requested = int(requested)
    if requested >= full:
        return full
    r = _round_up(max(requested, 1), multiple)
    return full if r >= full else r


def _lane_fold(prod):
    """(tb, tc) -> (tb, 128) by summing 128-lane-aligned column groups.

    Slices are lane-group aligned, so this lowers to pure VPU adds (no relayout).
    Requires tc % 128 == 0 (guaranteed on the multi-class-tile path).
    """
    tc = prod.shape[1]
    assert tc % 128 == 0
    out = prod[:, 0:128]
    for j in range(1, tc // 128):
        out = out + prod[:, j * 128:(j + 1) * 128]
    return out


def _logits_to_predicate_kernel(x_ref, d_ref, o_ref, *scratch,
                                num_classes, tc, n_c, mask_classes):
    x = x_ref[...].astype(jnp.float32)
    d = d_ref[...].astype(jnp.float32)
    prod = jax.nn.sigmoid(x) * d                      # EUP + VPU elementwise, f32

    if n_c == 1:
        # Single class tile per batch tile: compute, (mask), reduce, one store.
        if mask_classes:
            col = jax.lax.broadcasted_iota(jnp.int32, prod.shape, 1)
            prod = jnp.where(col < num_classes, prod, 0.0)
        o_ref[...] = jnp.sum(prod, axis=1, keepdims=True)
        return

    # Multi class-tile reduction path: lane-wise partial sums in VMEM scratch.
    acc_ref = scratch[0]                              # (tb, 128) f32
    k = pl.program_id(1)

    @pl.when(k == 0)
    def _():
        acc_ref[...] = jnp.zeros_like(acc_ref)

    if mask_classes:
        # Only the last class tile is partial; gate the mask so interior tiles
        # pay no iota/compare/select cost.
        @pl.when(k < n_c - 1)
        def _():
            acc_ref[...] += _lane_fold(prod)

        @pl.when(k == n_c - 1)
        def _():
            col = k * tc + jax.lax.broadcasted_iota(jnp.int32, prod.shape, 1)
            # where (not multiply) so NaN/Inf garbage in padded lanes cannot leak.
            acc_ref[...] += _lane_fold(jnp.where(col < num_classes, prod, 0.0))
    else:
        acc_ref[...] += _lane_fold(prod)

    # One cross-lane (XLU) reduce and one output store per batch tile.
    @pl.when(k == n_c - 1)
    def _():
        o_ref[...] = jnp.sum(acc_ref[...], axis=1, keepdims=True)


def logits_to_predicate(x: jax.Array, d: jax.Array, *,
                        block_batch: int | None = None,
                        block_classes: int | None = None) -> jax.Array:
    """Pallas implementation of LogitsToPredicate.forward(x, d)."""
    assert x.shape == d.shape and x.ndim == 2, "x and d must both be [batch, classes]"
    batch, num_classes = x.shape
    out_dtype = jnp.promote_types(x.dtype, d.dtype)

    # Sublane granularity: sub-32-bit dtypes pack 2 rows per sublane.
    packed = (jnp.dtype(x.dtype).itemsize < 4) or (jnp.dtype(d.dtype).itemsize < 4)
    sub = 16 if packed else 8

    # ---- batch tile ----------------------------------------------------------
    if block_batch is not None:
        tb = _norm_block(block_batch, batch, sub)
    elif batch <= max(_MIN_SPLIT_BATCH, 2 * sub):
        tb = batch                                   # full dim: always a legal block
    else:
        # Guarantee >= 2 steps on the "parallel" axis so both v7x TensorCores
        # stream data; round to the sublane granularity for clean layouts.
        tb = min(_MAX_TB, _round_up(pl.cdiv(batch, 2), sub))

    # ---- class tile ----------------------------------------------------------
    if block_classes is not None:
        tc = _norm_block(block_classes, num_classes, 128)
    else:
        # 2 inputs x 2 pipeline buffers + ~3 tile-sized f32 intermediates
        # (x_f32, d_f32, prod) so enlarging tiles cannot blow the VMEM budget.
        bytes_per_elem = 2 * (x.dtype.itemsize + d.dtype.itemsize) + 3 * 4
        budget_elems = max(128, _VMEM_INPUT_BUDGET // (bytes_per_elem * tb))
        tc_max = max(128, (budget_elems // 128) * 128)
        tc = num_classes if num_classes <= tc_max else tc_max

    n_b = pl.cdiv(batch, tb)
    n_c = pl.cdiv(num_classes, tc)
    mask_classes = (num_classes % tc) != 0
    if n_c > 1 and tc % 128 != 0:
        raise ValueError(f"class tile {tc} must be a multiple of 128 when tiled")

    kernel = functools.partial(
        _logits_to_predicate_kernel,
        num_classes=num_classes, tc=tc, n_c=n_c, mask_classes=mask_classes)

    scratch_shapes = [] if n_c == 1 else [pltpu.VMEM((tb, 128), jnp.float32)]

    out2d = pl.pallas_call(
        kernel,
        out_shape=jax.ShapeDtypeStruct((batch, 1), jnp.float32),
        grid_spec=pltpu.PrefetchScalarGridSpec(
            num_scalar_prefetch=0,
            grid=(n_b, n_c),
            in_specs=[
                pl.BlockSpec((tb, tc), lambda i, k: (i, k)),
                pl.BlockSpec((tb, tc), lambda i, k: (i, k)),
            ],
            out_specs=pl.BlockSpec((tb, 1), lambda i, k: (i, 0)),
            scratch_shapes=scratch_shapes,
        ),
        compiler_params=pltpu.CompilerParams(
            dimension_semantics=("parallel", "arbitrary"),
            vmem_limit_bytes=_VMEM_LIMIT_BYTES,
        ),
    )(x, d)

    out = out2d.reshape(batch)              # (batch, 1) -> (batch): bitcast reshape
    return out if out_dtype == jnp.float32 else out.astype(out_dtype)


if __name__ == "__main__":
    key = jax.random.PRNGKey(0)
    k_x, k_d, k_x2, k_d2, k_x3, k_d3 = jax.random.split(key, 6)

    # 1) Primary small test: one-hot grounding d (the typical LTN use), f32.
    batch, num_classes = 8, 32
    x = jax.random.normal(k_x, (batch, num_classes), dtype=jnp.float32)
    labels = jax.random.randint(k_d, (batch,), 0, num_classes)
    d = jax.nn.one_hot(labels, num_classes, dtype=jnp.float32)

    out = logits_to_predicate(x, d)
    jax.block_until_ready(out)
    ref = jnp.sum(jax.nn.sigmoid(x) * d, axis=1)
    assert out.shape == (batch,)
    assert jnp.allclose(out, ref, atol=1e-6), (out, ref)

    # 2) Tiled / accumulating / masked-edge-class-tile path with forced small
    #    tiles: grid = (3 batch tiles, 2 class tiles), last class tile partial.
    b2, c2 = 24, 200
    x2 = jax.random.normal(k_x2, (b2, c2), dtype=jnp.float32)
    d2 = jax.random.uniform(k_d2, (b2, c2), dtype=jnp.float32)
    out2 = logits_to_predicate(x2, d2, block_batch=8, block_classes=128)
    jax.block_until_ready(out2)
    ref2 = jnp.sum(jax.nn.sigmoid(x2) * d2, axis=1)
    assert out2.shape == (b2,)
    assert jnp.allclose(out2, ref2, atol=1e-5, rtol=1e-5), (out2, ref2)

    # 3) bf16 inputs + auto batch split (2 parallel steps, partial batch edge tile).
    b3, c3 = 48, 96
    x3 = jax.random.normal(k_x3, (b3, c3), dtype=jnp.float32).astype(jnp.bfloat16)
    labels3 = jax.random.randint(k_d3, (b3,), 0, c3)
    d3 = jax.nn.one_hot(labels3, c3, dtype=jnp.bfloat16)
    out3 = logits_to_predicate(x3, d3)
    jax.block_until_ready(out3)
    ref3 = jnp.sum(jax.nn.sigmoid(x3.astype(jnp.float32)) * d3.astype(jnp.float32),
                   axis=1)
    assert out3.shape == (b3,)
    assert out3.dtype == jnp.bfloat16
    assert jnp.allclose(out3.astype(jnp.float32), ref3, atol=2e-2), (out3, ref3)

    print("KERNEL_OK")
</pallas_src>

<mosaic_0001>
module attributes {stable_mosaic.version = 11 : i64} {
  func.func @_logits_to_predicate_kernel(%arg0: i32, %arg1: i32, %arg2: memref<8x32xf32, #tpu.memory_space<vmem>>, %arg3: memref<8x32xf32, #tpu.memory_space<vmem>>, %arg4: memref<8x1xf32, #tpu.memory_space<vmem>>) attributes {dimension_semantics = [#tpu.dimension_semantics<parallel>, #tpu.dimension_semantics<arbitrary>], iteration_bounds = array<i64: 1, 1>, scalar_prefetch = 0 : i64, scratch_operands = 0 : i64, tpu.core_type = #tpu.core_type<tc>, window_params = [{transform_indices = @transform_0, window_bounds = array<i64: 8, 32>}, {transform_indices = @transform_1, window_bounds = array<i64: 8, 32>}, {transform_indices = @transform_2, window_bounds = array<i64: 8, 1>}]} {
    %c0 = arith.constant 0 : index
    %c0_0 = arith.constant 0 : index
    %0 = vector.load %arg2[%c0, %c0_0] : memref<8x32xf32, #tpu.memory_space<vmem>>, vector<8x32xf32>
    %c0_1 = arith.constant 0 : index
    %c0_2 = arith.constant 0 : index
    %1 = vector.load %arg3[%c0_1, %c0_2] : memref<8x32xf32, #tpu.memory_space<vmem>>, vector<8x32xf32>
    %2 = arith.negf %0 : vector<8x32xf32>
    %3 = math.exp %2 : vector<8x32xf32>
    %cst = arith.constant 1.000000e+00 : f32
    %4 = vector.broadcast %cst : f32 to vector<8x32xf32>
    %5 = arith.addf %4, %3 : vector<8x32xf32>
    %6 = arith.divf %4, %5 : vector<8x32xf32>
    %7 = arith.mulf %6, %1 : vector<8x32xf32>
    %cst_3 = arith.constant dense<0.000000e+00> : vector<8xf32>
    %8 = vector.multi_reduction <add>, %7, %cst_3 [1] : vector<8x32xf32> to vector<8xf32>
    %9 = vector.shape_cast %8 : vector<8xf32> to vector<8x1xf32>
    %c0_4 = arith.constant 0 : index
    %c0_5 = arith.constant 0 : index
    %10 = vector.load %arg4[%c0_4, %c0_5] : memref<8x1xf32, #tpu.memory_space<vmem>>, vector<8x1xf32>
    tpu.vector_store %arg4[%c0_4, %c0_5], %9 {strides = array<i32>} : memref<8x1xf32, #tpu.memory_space<vmem>>, vector<8x1xf32>,
    return
  }
  func.func @transform_0(%arg0: i32, %arg1: i32) -> (i32, i32) {
    %c0_i32 = arith.constant 0 : i32
    return %arg0, %arg1 : i32, i32
  }
  func.func @transform_1(%arg0: i32, %arg1: i32) -> (i32, i32) {
    %c0_i32 = arith.constant 0 : i32
    return %arg0, %arg1 : i32, i32
  }
  func.func @transform_2(%arg0: i32, %arg1: i32) -> (i32, i32) {
    %c0_i32 = arith.constant 0 : i32
    %c0_i32_0 = arith.constant 0 : i32
    return %arg0, %c0_i32 : i32, i32
  }
}

</mosaic_0001>

<bundles_post_ra>
// kernel: tpu_custom_call.1
= control target key start
LH: loop header
LB: loop body
LE: loop exit
PB: predicated region body
PF: predicated region fallthrough
CT: control target
= control target key end

     0   :  { %7 = vsyncpa [#allocation3], 0  ;;  %s133_s0 = inlined_call_operand.hbm [shape: f32[8,32], index: 0, kind: input, shape index: {}]   ;;  %s134_s1 = inlined_call_operand.hbm [shape: f32[8,32], index: 1, kind: input, shape index: {}]   ;;  %s135_s2 = inlined_call_operand.vmem [shape: f32[8,1], index: 2, kind: output, shape index: {}]  }
   0x1   :  { %8 = vsyncpa [#allocation5], 0  ;;  %s107_s9 = smov [#allocation2]   ;;  %s108_s11 = smov [#allocation4]  }
   0x2   :  { %s15_s10 = sshll.u32 %s107_s9, 4  ;;  %s25_s12 = sshll.u32 %s108_s11, 4  ;;  %s16_s10 = int_to_ptr.vmem [resolvable:$true] %s15_s10  ;;  %s26_s12 = int_to_ptr.vmem [resolvable:$true] %s25_s12 }
   0x3   :  { %s71_s13 = scalar_lea.vmem %s16_s10, 128  ;;  %p76_p1 = scmp.lt.s32.totalorder %s16_s10, %s16_s10 }
   0x4   :  { %p72_p0 = scmp.ne.s32.totalorder %s16_s10, %s71_s13  ;;  %p77_p2 = scmp.lt.s32.totalorder %s71_s13, %s71_s13 }
   0x6   :  { %p78_p3 = por %p77_p2, %p76_p1 }
   0x8   :  { %p79_p4 = pnand %p78_p3, %p72_p0 }
   0xa   :  { %82 = shalt.err (!%p79_p4)
}
   0xb   :  { %18 = dma.hbm_to_vmem [thread:$0]  %s133_s0, 128, %s16_s10, [#allocation3]  }
   0xc   :  { %s91_s16 = scalar_lea.vmem %s26_s12, 128  ;;  %p96_p6 = scmp.lt.s32.totalorder %s26_s12, %s26_s12 }
   0xd   :  { %p92_p5 = scmp.ne.s32.totalorder %s26_s12, %s91_s16  ;;  %p97_p7 = scmp.lt.s32.totalorder %s91_s16, %s91_s16 }
   0xf   :  { %p98_p8 = por %p97_p7, %p96_p6 }
  0x11   :  { %p99_p9 = pnand %p98_p8, %p92_p5 }
  0x13   :  { %102 = shalt.err (!%p99_p9)
}
  0x14   :  { %28 = dma.hbm_to_vmem [thread:$0]  %s134_s1, 128, %s26_s12, [#allocation5]  }
  0x15   :  { %103 = dma.done.wait [#allocation3], 128  }
  0x16   :  { %104 = vsyncadd [#allocation3], 4294967168 }
  0x17   :  { %105 = dma.done.wait [#allocation5], 128  }
  0x18   :  { %106 = vsyncadd [#allocation5], 4294967168  ;;  %v35_v0 = vld [vmem:[#allocation2] sm:$0xff]  ;;  %v36_v4 = vld [vmem:[#allocation4] sm:$0xff]  ;;  %vm44_vm0 = vcmask 261120   ;;  %vm48_vm1 = vcmask 7168  }
  0x19   :  { %v56_v1 = vmul.f32 -1.442695, %v35_v0 }
  0x1b   :  { %59 = vpow2.f32 %v56_v1 }
  0x28   :  { %v60_v2 = vpop.eup %59 }
  0x29   :  { %v40_v3 = vadd.f32 1.0, %v60_v2 }
  0x2b   :  { %61 = vrcp.f32 %v40_v3 }
  0x38   :  { %v62_v5 = vpop.eup %61 }
  0x39   :  { %v43_v6 = vmul.f32 %v62_v5, %v36_v4 }
  0x3b   :  { %v45_v7 = vsel %vm44_vm0, %v43_v6, 0.0 }
  0x3c   :  { %46 = vadd.xlane.f32.xlu0 %v45_v7 }
  0xc5   :  { %v47_v8 = vpop.xlane.xlu0 %46 }
  0xc6   :  { %49 = vst.msk [vmem:[%s135_s2] sm:$0xff] %vm48_vm1, %v47_v8 }
  0xc7   :  { %54 = vsyncpa [#allocation3], 1 }
  0xc8   :  { %55 = vsyncpa [#allocation5], 1 }

</bundles_post_ra>
